<compile_context>
chip_gen: v7x
topology: tpu7x:2x2x1
jax: 0.10.0
libtpu: 0.0.40
codegen_flags: <defaults>
</compile_context>

<pallas_src>
import jax
import jax.numpy as jnp
from jax.experimental import pallas as pl
from jax.experimental.pallas import tpu as pltpu

KSIZE = 7
PAD = 3            # 'same' padding for kernel_size = 7
NTAP = 2 * KSIZE   # 14 (channel, ky) tap rows


def spatial_attention_kernel(band_ref, x_ref, o_ref, pad_ref, lhs_ref):
    # band_ref: (14*W, W)   f32 VMEM  banded conv weights (resident, MXU RHS)
    # x_ref   : (Nb, C, H, W)    VMEM input slab (Nb batch samples)
    # o_ref   : (Nb, 1, H, W)    VMEM output slab
    # pad_ref : (Nb, 2, H+6, W)  f32  row-padded avg/max maps (scratch)
    # lhs_ref : (Nb*H, 14*W)     f32  staged MXU LHS (scratch)
    Nb, C, H, W = x_ref.shape

    # ---- channel mean / max, chunked so vreg pressure stays bounded ----
    ck = max(1, min(C, (64 * 1024) // max(Nb * H * W * 4, 1)))
    n_full = C // ck
    rem = C - n_full * ck

    def red_body(i, carry):
        s, m = carry
        c0 = pl.multiple_of(i * ck, ck)
        xk = x_ref[:, pl.ds(c0, ck)].astype(jnp.float32)        # (Nb, ck, H, W)
        return s + jnp.sum(xk, axis=1), jnp.maximum(m, jnp.max(xk, axis=1))

    s0 = jnp.zeros((Nb, H, W), jnp.float32)
    m0 = jnp.full((Nb, H, W), -jnp.inf, jnp.float32)
    s, m = jax.lax.fori_loop(0, n_full, red_body, (s0, m0), unroll=min(n_full, 8))
    if rem:
        xk = x_ref[:, pl.ds(n_full * ck, rem)].astype(jnp.float32)
        s = s + jnp.sum(xk, axis=1)
        m = jnp.maximum(m, jnp.max(xk, axis=1))
    avg = s * (1.0 / C)

    # ---- row-padded 2-channel feature map ----
    # Re-zero only the 3 top + 3 bottom border rows (cheap); interior rows are fully
    # overwritten every step.  No full-scratch memset, no program_id==0 init.
    border = jnp.zeros((Nb, 2, PAD, W), jnp.float32)
    pad_ref[:, :, pl.ds(0, PAD), :] = border
    pad_ref[:, :, pl.ds(PAD + H, PAD), :] = border
    pad_ref[:, 0, pl.ds(PAD, H), :] = avg
    pad_ref[:, 1, pl.ds(PAD, H), :] = m

    # ---- 7x7 conv as a single MXU matmul ----
    # LHS column band t = c*7 + ky holds pad[:, c, ky:ky+H, :]; the banded weight matrix
    # carries the kx taps (and the column zero-padding) on its diagonals.
    t = 0
    for c in range(2):
        for ky in range(KSIZE):
            slab = pad_ref[:, c, pl.ds(ky, H), :].reshape(Nb * H, W)
            lhs_ref[:, pl.ds(t * W, W)] = slab
            t += 1
    conv = jnp.dot(lhs_ref[...], band_ref[...],
                   preferred_element_type=jnp.float32)           # (Nb*H, W)

    # ---- epilogue: sigmoid(conv) * conv (sigmoid -> EUP) ----
    out = jax.nn.sigmoid(conv) * conv
    o_ref[...] = out.reshape(Nb, 1, H, W).astype(o_ref.dtype)


def _build_band_matrix(weight, W):
    """(1,2,7,7) conv weight -> (2*7*W, W) f32 banded MXU operand.

    band[(c*7+ky)*W + j, x] = w[c, ky, j - x + PAD] when 0 <= j-x+PAD < 7, else 0.
    The conv's 'same' zero padding along the width is folded in here, so the kernel
    scratch only needs row padding."""
    w = jnp.asarray(weight, jnp.float32).reshape(2, KSIZE, KSIZE)
    j = jnp.arange(W)[:, None]
    x = jnp.arange(W)[None, :]
    kx = j - x + PAD                                   # (W, W)
    mask = (kx >= 0) & (kx < KSIZE)
    taps = w[:, :, jnp.clip(kx, 0, KSIZE - 1)]         # (2, 7, W, W)
    band = jnp.where(mask[None, None], taps, 0.0)
    return band.reshape(NTAP * W, W)


def _pick_nb(N, C, H, W, vmem_budget=24 << 20, vreg_budget=64 << 10):
    """Samples per grid step: amortize the ~0.35us/step overhead, stay inside the default
    scoped-VMEM budget (v7x has half the VMEM of v5e/v6e), keep reduction accumulators
    vreg-resident, and keep >=2 grid steps so both v7x TensorCores get work."""
    per_sample = 4 * (2 * C * H * W              # double-buffered input block
                      + 2 * H * W                # double-buffered output block
                      + 2 * (H + 2 * PAD) * W    # pad scratch
                      + NTAP * H * W)            # staged LHS scratch
    cap_vmem = max(1, vmem_budget // per_sample)
    cap_vreg = max(1, vreg_budget // (4 * H * W))
    nb = max(1, int(min(N, 8, cap_vmem, cap_vreg, max(1, N // 2))))
    while N % nb != 0:
        nb -= 1
    return nb


def spatial_attention(x, weight, *, nb=None):
    """x: (N, C, H, W); weight: (1, 2, 7, 7) -> (N, 1, H, W)."""
    N, C, H, W = x.shape
    if nb is None:
        nb = _pick_nb(N, C, H, W)
    assert N % nb == 0, (N, nb)
    band = _build_band_matrix(weight, W)               # (14*W, W)

    return pl.pallas_call(
        spatial_attention_kernel,
        out_shape=jax.ShapeDtypeStruct((N, 1, H, W), x.dtype),
        grid_spec=pltpu.PrefetchScalarGridSpec(
            num_scalar_prefetch=0,
            grid=(N // nb,),
            in_specs=[
                # Banded weights: constant block index -> DMA'd once, stays VMEM-resident.
                pl.BlockSpec((NTAP * W, W), lambda n: (0, 0)),
                pl.BlockSpec((nb, C, H, W), lambda n: (n, 0, 0, 0)),
            ],
            out_specs=pl.BlockSpec((nb, 1, H, W), lambda n: (n, 0, 0, 0)),
            scratch_shapes=[
                pltpu.VMEM((nb, 2, H + 2 * PAD, W), jnp.float32),
                pltpu.VMEM((nb * H, NTAP * W), jnp.float32),
            ],
        ),
        compiler_params=pltpu.CompilerParams(
            dimension_semantics=("parallel",)),
    )(band, x)


def spatial_attention_reference(x, weight):
    avg = jnp.mean(x, axis=1, keepdims=True)
    mx = jnp.max(x, axis=1, keepdims=True)
    feat = jnp.concatenate([avg, mx], axis=1)
    conv = jax.lax.conv_general_dilated(
        feat, weight, window_strides=(1, 1),
        padding=((PAD, PAD), (PAD, PAD)),
        dimension_numbers=("NCHW", "OIHW", "NCHW"))
    return jax.nn.sigmoid(conv) * conv


if __name__ == "__main__":
    key = jax.random.PRNGKey(0)
    k_x, k_w = jax.random.split(key)

    N, C, H, W = 2, 4, 16, 16
    x = jax.random.normal(k_x, (N, C, H, W), dtype=jnp.float32)
    # Deterministic synthetic conv weight (shape matches nn.Conv2d(2, 1, 7, bias=False)).
    weight = 0.1 * jax.random.normal(k_w, (1, 2, KSIZE, KSIZE), dtype=jnp.float32)

    out = jax.block_until_ready(spatial_attention(x, weight))
    ref = jax.block_until_ready(spatial_attention_reference(x, weight))

    assert out.shape == (N, 1, H, W), out.shape
    err = float(jnp.max(jnp.abs(out - ref)))
    assert err < 1e-4, err
    print("KERNEL_OK")
</pallas_src>

<mosaic_0001>
module attributes {stable_mosaic.version = 11 : i64} {
  func.func @spatial_attention_kernel(%arg0: i32, %arg1: memref<224x16xf32, #tpu.memory_space<vmem>>, %arg2: memref<1x4x16x16xf32, #tpu.memory_space<vmem>>, %arg3: memref<1x1x16x16xf32, #tpu.memory_space<vmem>>, %arg4: memref<1x2x22x16xf32, #tpu.memory_space<vmem>>, %arg5: memref<16x224xf32, #tpu.memory_space<vmem>>) attributes {dimension_semantics = [#tpu.dimension_semantics<parallel>], iteration_bounds = array<i64: 2>, scalar_prefetch = 0 : i64, scratch_operands = 2 : i64, tpu.core_type = #tpu.core_type<tc>, window_params = [{pipeline_mode = #tpu.pipeline_mode<synchronous>, transform_indices = @transform_0, window_bounds = array<i64: 224, 16>}, {transform_indices = @transform_1, window_bounds = array<i64: 1, 4, 16, 16>}, {transform_indices = @transform_2, window_bounds = array<i64: 1, 1, 16, 16>}]} {
    %cst = arith.constant 0.000000e+00 : f32
    %0 = vector.broadcast %cst : f32 to vector<1x16x16xf32>
    %cst_0 = arith.constant 0xFF800000 : f32
    %1 = vector.broadcast %cst_0 : f32 to vector<1x16x16xf32>
    %c0_i32 = arith.constant 0 : i32
    %c4_i32 = arith.constant 4 : i32
    %2 = arith.muli %c0_i32, %c4_i32 : i32
    %3 = tpu.assume_multiple %2, 4 : i32
    %c0 = arith.constant 0 : index
    %4 = arith.index_cast %3 : i32 to index
    %c0_1 = arith.constant 0 : index
    %c0_2 = arith.constant 0 : index
    %5 = vector.load %arg2[%c0, %4, %c0_1, %c0_2] : memref<1x4x16x16xf32, #tpu.memory_space<vmem>>, vector<1x4x16x16xf32>
    %cst_3 = arith.constant dense<0.000000e+00> : vector<1x16x16xf32>
    %6 = vector.multi_reduction <add>, %5, %cst_3 [1] : vector<1x4x16x16xf32> to vector<1x16x16xf32>
    %7 = arith.addf %0, %6 : vector<1x16x16xf32>
    %cst_4 = arith.constant dense<0xFF800000> : vector<1x16x16xf32>
    %8 = vector.multi_reduction <maximumf>, %5, %cst_4 [1] : vector<1x4x16x16xf32> to vector<1x16x16xf32>
    %9 = arith.maximumf %1, %8 : vector<1x16x16xf32>
    %c1_i32 = arith.constant 1 : i32
    %cst_5 = arith.constant 2.500000e-01 : f32
    %10 = vector.broadcast %cst_5 : f32 to vector<1x16x16xf32>
    %11 = arith.mulf %7, %10 : vector<1x16x16xf32>
    %cst_6 = arith.constant 0.000000e+00 : f32
    %12 = vector.broadcast %cst_6 : f32 to vector<1x2x3x16xf32>
    %c0_7 = arith.constant 0 : index
    %c0_8 = arith.constant 0 : index
    %c0_9 = arith.constant 0 : index
    %c0_10 = arith.constant 0 : index
    %13 = vector.load %arg4[%c0_7, %c0_8, %c0_9, %c0_10] : memref<1x2x22x16xf32, #tpu.memory_space<vmem>>, vector<1x2x3x16xf32>
    tpu.vector_store %arg4[%c0_7, %c0_8, %c0_9, %c0_10], %12 {strides = array<i32>} : memref<1x2x22x16xf32, #tpu.memory_space<vmem>>, vector<1x2x3x16xf32>,
    %c0_11 = arith.constant 0 : index
    %c0_12 = arith.constant 0 : index
    %c19 = arith.constant 19 : index
    %c0_13 = arith.constant 0 : index
    %14 = vector.load %arg4[%c0_11, %c0_12, %c19, %c0_13] : memref<1x2x22x16xf32, #tpu.memory_space<vmem>>, vector<1x2x3x16xf32>
    tpu.vector_store %arg4[%c0_11, %c0_12, %c19, %c0_13], %12 {strides = array<i32>} : memref<1x2x22x16xf32, #tpu.memory_space<vmem>>, vector<1x2x3x16xf32>,
    %c0_14 = arith.constant 0 : index
    %c0_15 = arith.constant 0 : index
    %c3 = arith.constant 3 : index
    %c0_16 = arith.constant 0 : index
    %15 = vector.load %arg4[%c0_14, %c0_15, %c3, %c0_16] : memref<1x2x22x16xf32, #tpu.memory_space<vmem>>, vector<1x1x16x16xf32>
    %16 = vector.shape_cast %15 : vector<1x1x16x16xf32> to vector<1x16x16xf32>
    %17 = vector.shape_cast %11 : vector<1x16x16xf32> to vector<1x1x16x16xf32>
    tpu.vector_store %arg4[%c0_14, %c0_15, %c3, %c0_16], %17 {strides = array<i32>} : memref<1x2x22x16xf32, #tpu.memory_space<vmem>>, vector<1x1x16x16xf32>,
    %c0_17 = arith.constant 0 : index
    %c1 = arith.constant 1 : index
    %c3_18 = arith.constant 3 : index
    %c0_19 = arith.constant 0 : index
    %18 = vector.load %arg4[%c0_17, %c1, %c3_18, %c0_19] : memref<1x2x22x16xf32, #tpu.memory_space<vmem>>, vector<1x1x16x16xf32>
    %19 = vector.shape_cast %18 : vector<1x1x16x16xf32> to vector<1x16x16xf32>
    %20 = vector.shape_cast %9 : vector<1x16x16xf32> to vector<1x1x16x16xf32>
    tpu.vector_store %arg4[%c0_17, %c1, %c3_18, %c0_19], %20 {strides = array<i32>} : memref<1x2x22x16xf32, #tpu.memory_space<vmem>>, vector<1x1x16x16xf32>,
    %c0_20 = arith.constant 0 : index
    %c0_21 = arith.constant 0 : index
    %c0_22 = arith.constant 0 : index
    %c0_23 = arith.constant 0 : index
    %21 = vector.load %arg4[%c0_20, %c0_21, %c0_22, %c0_23] : memref<1x2x22x16xf32, #tpu.memory_space<vmem>>, vector<1x1x16x16xf32>
    %22 = vector.shape_cast %21 : vector<1x1x16x16xf32> to vector<1x16x16xf32>
    %23 = vector.shape_cast %22 : vector<1x16x16xf32> to vector<16x16xf32>
    %c0_24 = arith.constant 0 : index
    %c0_25 = arith.constant 0 : index
    %24 = vector.load %arg5[%c0_24, %c0_25] : memref<16x224xf32, #tpu.memory_space<vmem>>, vector<16x16xf32>
    tpu.vector_store %arg5[%c0_24, %c0_25], %23 {strides = array<i32>} : memref<16x224xf32, #tpu.memory_space<vmem>>, vector<16x16xf32>,
    %c0_26 = arith.constant 0 : index
    %c0_27 = arith.constant 0 : index
    %c1_28 = arith.constant 1 : index
    %c0_29 = arith.constant 0 : index
    %25 = vector.load %arg4[%c0_26, %c0_27, %c1_28, %c0_29] : memref<1x2x22x16xf32, #tpu.memory_space<vmem>>, vector<1x1x16x16xf32>
    %26 = vector.shape_cast %25 : vector<1x1x16x16xf32> to vector<1x16x16xf32>
    %27 = vector.shape_cast %26 : vector<1x16x16xf32> to vector<16x16xf32>
    %c0_30 = arith.constant 0 : index
    %c16 = arith.constant 16 : index
    %28 = vector.load %arg5[%c0_30, %c16] : memref<16x224xf32, #tpu.memory_space<vmem>>, vector<16x16xf32>
    tpu.vector_store %arg5[%c0_30, %c16], %27 {strides = array<i32>} : memref<16x224xf32, #tpu.memory_space<vmem>>, vector<16x16xf32>,
    %c0_31 = arith.constant 0 : index
    %c0_32 = arith.constant 0 : index
    %c2 = arith.constant 2 : index
    %c0_33 = arith.constant 0 : index
    %29 = vector.load %arg4[%c0_31, %c0_32, %c2, %c0_33] : memref<1x2x22x16xf32, #tpu.memory_space<vmem>>, vector<1x1x16x16xf32>
    %30 = vector.shape_cast %29 : vector<1x1x16x16xf32> to vector<1x16x16xf32>
    %31 = vector.shape_cast %30 : vector<1x16x16xf32> to vector<16x16xf32>
    %c0_34 = arith.constant 0 : index
    %c32 = arith.constant 32 : index
    %32 = vector.load %arg5[%c0_34, %c32] : memref<16x224xf32, #tpu.memory_space<vmem>>, vector<16x16xf32>
    tpu.vector_store %arg5[%c0_34, %c32], %31 {strides = array<i32>} : memref<16x224xf32, #tpu.memory_space<vmem>>, vector<16x16xf32>,
    %c0_35 = arith.constant 0 : index
    %c0_36 = arith.constant 0 : index
    %c3_37 = arith.constant 3 : index
    %c0_38 = arith.constant 0 : index
    %33 = vector.load %arg4[%c0_35, %c0_36, %c3_37, %c0_38] : memref<1x2x22x16xf32, #tpu.memory_space<vmem>>, vector<1x1x16x16xf32>
    %34 = vector.shape_cast %33 : vector<1x1x16x16xf32> to vector<1x16x16xf32>
    %35 = vector.shape_cast %34 : vector<1x16x16xf32> to vector<16x16xf32>
    %c0_39 = arith.constant 0 : index
    %c48 = arith.constant 48 : index
    %36 = vector.load %arg5[%c0_39, %c48] : memref<16x224xf32, #tpu.memory_space<vmem>>, vector<16x16xf32>
    tpu.vector_store %arg5[%c0_39, %c48], %35 {strides = array<i32>} : memref<16x224xf32, #tpu.memory_space<vmem>>, vector<16x16xf32>,
    %c0_40 = arith.constant 0 : index
    %c0_41 = arith.constant 0 : index
    %c4 = arith.constant 4 : index
    %c0_42 = arith.constant 0 : index
    %37 = vector.load %arg4[%c0_40, %c0_41, %c4, %c0_42] : memref<1x2x22x16xf32, #tpu.memory_space<vmem>>, vector<1x1x16x16xf32>
    %38 = vector.shape_cast %37 : vector<1x1x16x16xf32> to vector<1x16x16xf32>
    %39 = vector.shape_cast %38 : vector<1x16x16xf32> to vector<16x16xf32>
    %c0_43 = arith.constant 0 : index
    %c64 = arith.constant 64 : index
    %40 = vector.load %arg5[%c0_43, %c64] : memref<16x224xf32, #tpu.memory_space<vmem>>, vector<16x16xf32>
    tpu.vector_store %arg5[%c0_43, %c64], %39 {strides = array<i32>} : memref<16x224xf32, #tpu.memory_space<vmem>>, vector<16x16xf32>,
    %c0_44 = arith.constant 0 : index
    %c0_45 = arith.constant 0 : index
    %c5 = arith.constant 5 : index
    %c0_46 = arith.constant 0 : index
    %41 = vector.load %arg4[%c0_44, %c0_45, %c5, %c0_46] : memref<1x2x22x16xf32, #tpu.memory_space<vmem>>, vector<1x1x16x16xf32>
    %42 = vector.shape_cast %41 : vector<1x1x16x16xf32> to vector<1x16x16xf32>
    %43 = vector.shape_cast %42 : vector<1x16x16xf32> to vector<16x16xf32>
    %c0_47 = arith.constant 0 : index
    %c80 = arith.constant 80 : index
    %44 = vector.load %arg5[%c0_47, %c80] : memref<16x224xf32, #tpu.memory_space<vmem>>, vector<16x16xf32>
    tpu.vector_store %arg5[%c0_47, %c80], %43 {strides = array<i32>} : memref<16x224xf32, #tpu.memory_space<vmem>>, vector<16x16xf32>,
    %c0_48 = arith.constant 0 : index
    %c0_49 = arith.constant 0 : index
    %c6 = arith.constant 6 : index
    %c0_50 = arith.constant 0 : index
    %45 = vector.load %arg4[%c0_48, %c0_49, %c6, %c0_50] : memref<1x2x22x16xf32, #tpu.memory_space<vmem>>, vector<1x1x16x16xf32>
    %46 = vector.shape_cast %45 : vector<1x1x16x16xf32> to vector<1x16x16xf32>
    %47 = vector.shape_cast %46 : vector<1x16x16xf32> to vector<16x16xf32>
    %c0_51 = arith.constant 0 : index
    %c96 = arith.constant 96 : index
    %48 = vector.load %arg5[%c0_51, %c96] : memref<16x224xf32, #tpu.memory_space<vmem>>, vector<16x16xf32>
    tpu.vector_store %arg5[%c0_51, %c96], %47 {strides = array<i32>} : memref<16x224xf32, #tpu.memory_space<vmem>>, vector<16x16xf32>,
    %c0_52 = arith.constant 0 : index
    %c1_53 = arith.constant 1 : index
    %c0_54 = arith.constant 0 : index
    %c0_55 = arith.constant 0 : index
    %49 = vector.load %arg4[%c0_52, %c1_53, %c0_54, %c0_55] : memref<1x2x22x16xf32, #tpu.memory_space<vmem>>, vector<1x1x16x16xf32>
    %50 = vector.shape_cast %49 : vector<1x1x16x16xf32> to vector<1x16x16xf32>
    %51 = vector.shape_cast %50 : vector<1x16x16xf32> to vector<16x16xf32>
    %c0_56 = arith.constant 0 : index
    %c112 = arith.constant 112 : index
    %52 = vector.load %arg5[%c0_56, %c112] : memref<16x224xf32, #tpu.memory_space<vmem>>, vector<16x16xf32>
    tpu.vector_store %arg5[%c0_56, %c112], %51 {strides = array<i32>} : memref<16x224xf32, #tpu.memory_space<vmem>>, vector<16x16xf32>,
    %c0_57 = arith.constant 0 : index
    %c1_58 = arith.constant 1 : index
    %c1_59 = arith.constant 1 : index
    %c0_60 = arith.constant 0 : index
    %53 = vector.load %arg4[%c0_57, %c1_58, %c1_59, %c0_60] : memref<1x2x22x16xf32, #tpu.memory_space<vmem>>, vector<1x1x16x16xf32>
    %54 = vector.shape_cast %53 : vector<1x1x16x16xf32> to vector<1x16x16xf32>
    %55 = vector.shape_cast %54 : vector<1x16x16xf32> to vector<16x16xf32>
    %c0_61 = arith.constant 0 : index
    %c128 = arith.constant 128 : index
    %56 = vector.load %arg5[%c0_61, %c128] : memref<16x224xf32, #tpu.memory_space<vmem>>, vector<16x16xf32>
    tpu.vector_store %arg5[%c0_61, %c128], %55 {strides = array<i32>} : memref<16x224xf32, #tpu.memory_space<vmem>>, vector<16x16xf32>,
    %c0_62 = arith.constant 0 : index
    %c1_63 = arith.constant 1 : index
    %c2_64 = arith.constant 2 : index
    %c0_65 = arith.constant 0 : index
    %57 = vector.load %arg4[%c0_62, %c1_63, %c2_64, %c0_65] : memref<1x2x22x16xf32, #tpu.memory_space<vmem>>, vector<1x1x16x16xf32>
    %58 = vector.shape_cast %57 : vector<1x1x16x16xf32> to vector<1x16x16xf32>
    %59 = vector.shape_cast %58 : vector<1x16x16xf32> to vector<16x16xf32>
    %c0_66 = arith.constant 0 : index
    %c144 = arith.constant 144 : index
    %60 = vector.load %arg5[%c0_66, %c144] : memref<16x224xf32, #tpu.memory_space<vmem>>, vector<16x16xf32>
    tpu.vector_store %arg5[%c0_66, %c144], %59 {strides = array<i32>} : memref<16x224xf32, #tpu.memory_space<vmem>>, vector<16x16xf32>,
    %c0_67 = arith.constant 0 : index
    %c1_68 = arith.constant 1 : index
    %c3_69 = arith.constant 3 : index
    %c0_70 = arith.constant 0 : index
    %61 = vector.load %arg4[%c0_67, %c1_68, %c3_69, %c0_70] : memref<1x2x22x16xf32, #tpu.memory_space<vmem>>, vector<1x1x16x16xf32>
    %62 = vector.shape_cast %61 : vector<1x1x16x16xf32> to vector<1x16x16xf32>
    %63 = vector.shape_cast %62 : vector<1x16x16xf32> to vector<16x16xf32>
    %c0_71 = arith.constant 0 : index
    %c160 = arith.constant 160 : index
    %64 = vector.load %arg5[%c0_71, %c160] : memref<16x224xf32, #tpu.memory_space<vmem>>, vector<16x16xf32>
    tpu.vector_store %arg5[%c0_71, %c160], %63 {strides = array<i32>} : memref<16x224xf32, #tpu.memory_space<vmem>>, vector<16x16xf32>,
    %c0_72 = arith.constant 0 : index
    %c1_73 = arith.constant 1 : index
    %c4_74 = arith.constant 4 : index
    %c0_75 = arith.constant 0 : index
    %65 = vector.load %arg4[%c0_72, %c1_73, %c4_74, %c0_75] : memref<1x2x22x16xf32, #tpu.memory_space<vmem>>, vector<1x1x16x16xf32>
    %66 = vector.shape_cast %65 : vector<1x1x16x16xf32> to vector<1x16x16xf32>
    %67 = vector.shape_cast %66 : vector<1x16x16xf32> to vector<16x16xf32>
    %c0_76 = arith.constant 0 : index
    %c176 = arith.constant 176 : index
    %68 = vector.load %arg5[%c0_76, %c176] : memref<16x224xf32, #tpu.memory_space<vmem>>, vector<16x16xf32>
    tpu.vector_store %arg5[%c0_76, %c176], %67 {strides = array<i32>} : memref<16x224xf32, #tpu.memory_space<vmem>>, vector<16x16xf32>,
    %c0_77 = arith.constant 0 : index
    %c1_78 = arith.constant 1 : index
    %c5_79 = arith.constant 5 : index
    %c0_80 = arith.constant 0 : index
    %69 = vector.load %arg4[%c0_77, %c1_78, %c5_79, %c0_80] : memref<1x2x22x16xf32, #tpu.memory_space<vmem>>, vector<1x1x16x16xf32>
    %70 = vector.shape_cast %69 : vector<1x1x16x16xf32> to vector<1x16x16xf32>
    %71 = vector.shape_cast %70 : vector<1x16x16xf32> to vector<16x16xf32>
    %c0_81 = arith.constant 0 : index
    %c192 = arith.constant 192 : index
    %72 = vector.load %arg5[%c0_81, %c192] : memref<16x224xf32, #tpu.memory_space<vmem>>, vector<16x16xf32>
    tpu.vector_store %arg5[%c0_81, %c192], %71 {strides = array<i32>} : memref<16x224xf32, #tpu.memory_space<vmem>>, vector<16x16xf32>,
    %c0_82 = arith.constant 0 : index
    %c1_83 = arith.constant 1 : index
    %c6_84 = arith.constant 6 : index
    %c0_85 = arith.constant 0 : index
    %73 = vector.load %arg4[%c0_82, %c1_83, %c6_84, %c0_85] : memref<1x2x22x16xf32, #tpu.memory_space<vmem>>, vector<1x1x16x16xf32>
    %74 = vector.shape_cast %73 : vector<1x1x16x16xf32> to vector<1x16x16xf32>
    %75 = vector.shape_cast %74 : vector<1x16x16xf32> to vector<16x16xf32>
    %c0_86 = arith.constant 0 : index
    %c208 = arith.constant 208 : index
    %76 = vector.load %arg5[%c0_86, %c208] : memref<16x224xf32, #tpu.memory_space<vmem>>, vector<16x16xf32>
    tpu.vector_store %arg5[%c0_86, %c208], %75 {strides = array<i32>} : memref<16x224xf32, #tpu.memory_space<vmem>>, vector<16x16xf32>,
    %c0_87 = arith.constant 0 : index
    %c0_88 = arith.constant 0 : index
    %77 = vector.load %arg5[%c0_87, %c0_88] : memref<16x224xf32, #tpu.memory_space<vmem>>, vector<16x224xf32>
    %c0_89 = arith.constant 0 : index
    %c0_90 = arith.constant 0 : index
    %78 = vector.load %arg1[%c0_89, %c0_90] : memref<224x16xf32, #tpu.memory_space<vmem>>, vector<224x16xf32>
    %cst_91 = arith.constant dense<0.000000e+00> : vector<16x16xf32>
    %79 = tpu.matmul %77, %78, %cst_91 {dimension_numbers = #tpu.dot_dimension_numbers<[1], [0], [0], [1], [0, 0, 1, 1], [], []>} : vector<16x224xf32>, vector<224x16xf32>, vector<16x16xf32> -> vector<16x16xf32>
    %80 = arith.negf %79 : vector<16x16xf32>
    %81 = math.exp %80 : vector<16x16xf32>
    %cst_92 = arith.constant 1.000000e+00 : f32
    %82 = vector.broadcast %cst_92 : f32 to vector<16x16xf32>
    %83 = arith.addf %82, %81 : vector<16x16xf32>
    %84 = arith.divf %82, %83 : vector<16x16xf32>
    %85 = arith.mulf %84, %79 : vector<16x16xf32>
    %86 = vector.shape_cast %85 : vector<16x16xf32> to vector<1x1x16x16xf32>
    %c0_93 = arith.constant 0 : index
    %c0_94 = arith.constant 0 : index
    %c0_95 = arith.constant 0 : index
    %c0_96 = arith.constant 0 : index
    %87 = vector.load %arg3[%c0_93, %c0_94, %c0_95, %c0_96] : memref<1x1x16x16xf32, #tpu.memory_space<vmem>>, vector<1x1x16x16xf32>
    tpu.vector_store %arg3[%c0_93, %c0_94, %c0_95, %c0_96], %86 {strides = array<i32>} : memref<1x1x16x16xf32, #tpu.memory_space<vmem>>, vector<1x1x16x16xf32>,
    return
  }
  func.func @transform_0(%arg0: i32) -> (i32, i32) {
    %c0_i32 = arith.constant 0 : i32
    %c0_i32_0 = arith.constant 0 : i32
    %c0_i32_1 = arith.constant 0 : i32
    return %c0_i32, %c0_i32_0 : i32, i32
  }
  func.func @transform_1(%arg0: i32) -> (i32, i32, i32, i32) {
    %c0_i32 = arith.constant 0 : i32
    %c0_i32_0 = arith.constant 0 : i32
    %c0_i32_1 = arith.constant 0 : i32
    %c0_i32_2 = arith.constant 0 : i32
    return %arg0, %c0_i32, %c0_i32_0, %c0_i32_1 : i32, i32, i32, i32
  }
  func.func @transform_2(%arg0: i32) -> (i32, i32, i32, i32) {
    %c0_i32 = arith.constant 0 : i32
    %c0_i32_0 = arith.constant 0 : i32
    %c0_i32_1 = arith.constant 0 : i32
    %c0_i32_2 = arith.constant 0 : i32
    return %arg0, %c0_i32, %c0_i32_0, %c0_i32_1 : i32, i32, i32, i32
  }
}

</mosaic_0001>

<bundles_post_ra>
// kernel: tpu_custom_call.1
= control target key start
LH: loop header
LB: loop body
LE: loop exit
PB: predicated region body
PF: predicated region fallthrough
CT: control target
= control target key end

     0   :  { %7 = vsyncpa [#allocation5], 0  ;;  %s1070_s0 = inlined_call_operand.vmem [shape: f32[224,16], index: 0, kind: input, shape index: {}]   ;;  %s1071_s1 = inlined_call_operand.vmem [shape: f32[2,4,16,16], index: 1, kind: input, shape index: {}]   ;;  %s1072_s2 = inlined_call_operand.hbm [shape: f32[2,1,16,16], index: 2, kind: output, shape index: {}]  }
   0x1   :  { %9 = vsyncpa [#allocation5 + $0x1], 0  ;;  %s797_s9 = smov 0   ;;  %s799_s10 = smov 0  }
   0x2   :  { %s801_s11 = smov 0   ;;  %s803_s12 = smov 0  }
   0x3 LB: > { %s818_s13 = sadd.s32 4294967295, %s768_s12   ;;  %s560_s14 = sadd.s32 4294967294, %s768_s12   ;;  %s768_s12 = sphi %s803_s12, %s1078_s12   ;;  %s764_s11 = sphi %s801_s11, %s1077_s11   ;;  %s760_s10 = sphi %s799_s10, %s1076_s10   ;;  %s756_s9 = sphi %s797_s9, %s1075_s9  }
   0x4   : > { %s822_s15 = sadd.s32 1, %s768_s12   ;;  %s69_s16 = sadd.s32 1, %s764_s11 }
   0x5   : > { %s66_s17 = ssub.s32 %s768_s12, %s822_s15  ;;  %p79_p0 = scmp.ne.s32.totalorder %s764_s11, %s760_s10 }
   0x6   : > { %p67_p1 = scmp.eq.s32.totalorder %s66_s17, 0  ;;  %p80_p2 = scmp.eq.s32.totalorder %s818_s13, 1 }
   0x7   : > { %p85_p3 = scmp.ne.s32.totalorder %s760_s10, %s756_s9  ;;  %p86_p4 = scmp.eq.s32.totalorder %s560_s14, 1 }
   0x8   : > { %s833_s18 = scalar_select %p67_p1, %s764_s11, %s69_s16  }
   0x9   : > { %p835_p5 = por %p80_p2, %p79_p0  ;;  %p839_p6 = por %p86_p4, %p85_p3 }
   0xa   : > { %p563_p7 = scmp.ge.s32.totalorder %s768_s12, 1  ;;  %p115_p8 = scmp.lt.s32.totalorder %s768_s12, 3 }
   0xc   : > { %p116_p9 = pnand %p563_p7, %p115_p8 }
   0xd   : > { %p137_p10 = scmp.lt.s32.totalorder (!%p116_p9), %s818_s13, 1  ;;  %vm185_vm0 = vcmask (!%p116_p9), 124928   ;;  %v770_v0 = vmov (!%p116_p9), 0.0   ;;  %v771_v1 = vmov (!%p116_p9), 0.0|0.0   ;;  %v358_v2 = vld [vmem:[%s1070_s0] sm:$0xff] (!%p116_p9)  ;;  %v359_v3 = vld [vmem:[%s1070_s0 + $0x8] sm:$0xff] (!%p116_p9) }
   0xe   : > { %119 = sbr.rel (%p116_p9) target bundleno = 464 (0x1d0), region = 28  ;;  %187 = vst.msk [vmem:[#allocation2 + $0x18] sm:$0x7] (!%p116_p9), %vm185_vm0, %v770_v0  ;;  %186 = vst.msk [vmem:[#allocation2] sm:$0x7] (!%p116_p9), %vm185_vm0, %v770_v0  ;;  %578 = vmatprep.subr.bf16.mxu0 (!%p116_p9), %v771_v1  ;;  %620 = vmatprep.subr.bf16.mxu1 (!%p116_p9), %v771_v1  ;;  %v579_v4 = vpack.c.bf16 (!%p116_p9), %v359_v3, %v358_v2  ;;  %vm152_vm1 = vcmask (!%p116_p9), 130048  }
   0xf   : > { %188 = vst.msk [vmem:[#allocation2 + $0x13] sm:$0x7] (!%p116_p9), %vm185_vm0, %v770_v0  ;;  %189 = vst.msk [vmem:[#allocation2 + $0x2b] sm:$0x7] (!%p116_p9), %vm185_vm0, %v770_v0  ;;  %v360_v28 = vld [vmem:[%s1070_s0 + $0x10] sm:$0xff] (!%p116_p9)  ;;  %v361_v29 = vld [vmem:[%s1070_s0 + $0x18] sm:$0xff] (!%p116_p9) }
  0x10   : > { %580 = vmatpush1.bf16.msra.mxu0 (!%p116_p9), %v579_v4  ;;  %634 = vmatpush1.bf16.msra.mxu1 (!%p116_p9), %v579_v4  ;;  %v362_v37 = vld [vmem:[%s1070_s0 + $0x20] sm:$0xff] (!%p116_p9)  ;;  %v363_v38 = vld [vmem:[%s1070_s0 + $0x28] sm:$0xff] (!%p116_p9)  ;;  %v582_v42 = vpack.c.bf16 (!%p116_p9), %v361_v29, %v360_v28  ;;  %v364_v47 = vld [vmem:[%s1070_s0 + $0x30] sm:$0xff] (!%p116_p9)  ;;  %s772_s27 = smov (!%p116_p9), 16   ;;  %s773_s28 = smov (!%p116_p9), 32   ;;  %vm209_vm2 = vcmask (!%p116_p9), 261248  }
  0x11   : > { %581 = vmatprep.subr.bf16.mxu0 (!%p116_p9), %v771_v1  ;;  %621 = vmatprep.subr.bf16.mxu1 (!%p116_p9), %v771_v1  ;;  %v585_v45 = vpack.c.bf16 (!%p116_p9), %v363_v38, %v362_v37  ;;  %v365_v48 = vld [vmem:[%s1070_s0 + $0x38] sm:$0xff] (!%p116_p9)  ;;  %v366_v52 = vld [vmem:[%s1070_s0 + $0x40] sm:$0xff] (!%p116_p9)  ;;  %v367_v53 = vld [vmem:[%s1070_s0 + $0x48] sm:$0xff] (!%p116_p9)  ;;  %s774_s3 = smov (!%p116_p9), 48   ;;  %vm222_vm3 = vcmask (!%p116_p9), 392448   ;;  %vm235_vm4 = vcmask (!%p116_p9), 523648  }
  0x12   : > { %v588_v51 = vpack.c.bf16 (!%p116_p9), %v365_v48, %v364_v47  ;;  %v591_v57 = vpack.c.bf16 (!%p116_p9), %v367_v53, %v366_v52  ;;  %v368_v63 = vld [vmem:[%s1070_s0 + $0x50] sm:$0xff] (!%p116_p9)  ;;  %v369_v3 = vld [vmem:[%s1070_s0 + $0x58] sm:$0xff] (!%p116_p9)  ;;  %vm248_vm5 = vcmask (!%p116_p9), 654848   ;;  %vm261_vm6 = vcmask (!%p116_p9), 786048   ;;  %s134_s5 = sand.u32 (!%p116_p9), 1, %s760_s10   ;;  %s779_s22 = smov (!%p116_p9), [#allocation4]  }
  0x13   : > { %vm274_vm7 = vcmask (!%p116_p9), 917248   ;;  %vm287_vm8 = vcmask (!%p116_p9), 1048448   ;;  %vm386_vm9 = vcmask (!%p116_p9), 785408   ;;  %s564_s6 = sshll.u32 (!%p116_p9), %s134_s5, 4  ;;  %s1029_s21 = scalar_lea.sflag (!%p116_p9), [#allocation5], %s134_s5 }
  0x14   : > { %583 = vmatpush1.bf16.msra.mxu0 (!%p116_p9), %v582_v42  ;;  %635 = vmatpush1.bf16.msra.mxu1 (!%p116_p9), %v582_v42  ;;  %s136_s7 = scalar_lea.vmem (!%p116_p9), [#allocation4], %s564_s6  ;;  %s710_s23 = sshll.u32 (!%p116_p9), %s779_s22, 4  ;;  %s711_s23 = int_to_ptr.vmem [resolvable:$false] %s710_s23 }
  0x15   : > { %s138_s25 = scalar_select %p137_p10, %s818_s13, 1  ;;  %584 = vmatprep.subr.bf16.mxu0 %v771_v1  ;;  %622 = vmatprep.subr.bf16.mxu1 %v771_v1 }
  0x16   : > { %s498_s8 = sshll.u32 %s136_s7, 4  ;;  %s712_s24 = scalar_lea.vmem %s711_s23, 512  ;;  %s1020_s8 = int_to_ptr.vmem [resolvable:$true] %s498_s8 }
  0x17   : > { %s576_s26 = sshll.u32 %s138_s25, 6  ;;  %p713_p0 = scmp.lt.s32.totalorder %s1020_s8, %s711_s23 }
  0x18   : > { %s141_s29 = scalar_lea.vmem %s1071_s1, %s576_s26  ;;  %586 = vmatpush1.bf16.msra.mxu0 %v585_v45  ;;  %636 = vmatpush1.bf16.msra.mxu1 %v585_v45  ;;  %s777_s26 = smov 96  }
  0x19   : > { %v144_v5 = vld [vmem:[%s141_s29] sm:$0xff]  ;;  %v145_v6 = vld [vmem:[%s141_s29 + $0x8] sm:$0xff]  ;;  %v146_v7 = vld [vmem:[%s141_s29 + $0x10] sm:$0xff]  ;;  %587 = vmatprep.subr.bf16.mxu0 %v771_v1  ;;  %623 = vmatprep.subr.bf16.mxu1 %v771_v1 }
  0x1a   : > { %v147_v8 = vld [vmem:[%s141_s29 + $0x18] sm:$0xff]  ;;  %v148_v9 = vld [vmem:[%s141_s29 + $0x20] sm:$0xff]  ;;  %v149_v10 = vld [vmem:[%s141_s29 + $0x28] sm:$0xff]  ;;  %v154_v11 = vsel %vm152_vm1, %v146_v7, 0.0  ;;  %v160_v12 = vsel %vm152_vm1, %v145_v6, 0.0  ;;  %v169_v13 = vsel %vm152_vm1, %v144_v5, -inf }
  0x1b   : > { %v150_v14 = vld [vmem:[%s141_s29 + $0x30] sm:$0xff]  ;;  %v151_v15 = vld [vmem:[%s141_s29 + $0x38] sm:$0xff]  ;;  %v161_v16 = vsel %vm152_vm1, %v147_v8, 0.0  ;;  %v170_v17 = vsel %vm152_vm1, %v146_v7, -inf  ;;  %v171_v18 = vsel %vm152_vm1, %v148_v9, -inf  ;;  %v176_v19 = vsel %vm152_vm1, %v145_v6, -inf }
  0x1c   : > { %v172_v20 = vmax.f32 %v169_v13, %v171_v18  ;;  %v173_v21 = vsel %vm152_vm1, %v150_v14, -inf  ;;  %v177_v22 = vsel %vm152_vm1, %v147_v8, -inf  ;;  %v178_v23 = vsel %vm152_vm1, %v149_v10, -inf  ;;  %589 = vmatpush1.bf16.msra.mxu0 %v588_v51  ;;  %637 = vmatpush1.bf16.msra.mxu1 %v588_v51  ;;  %v370_v6 = vld [vmem:[%s1070_s0 + $0x60] sm:$0xff]  ;;  %v371_v7 = vld [vmem:[%s1070_s0 + $0x68] sm:$0xff] }
  0x1d   : > { %v174_v24 = vmax.f32 %v170_v17, %v173_v21  ;;  %v179_v25 = vmax.f32 %v176_v19, %v178_v23  ;;  %v180_v26 = vsel %vm152_vm1, %v151_v15, -inf  ;;  %v153_v27 = vsel %vm152_vm1, %v144_v5, 0.0  ;;  %590 = vmatprep.subr.bf16.mxu0 %v771_v1  ;;  %624 = vmatprep.subr.bf16.mxu1 %v771_v1  ;;  %v377_v21 = vld [vmem:[%s1070_s0 + $0x98] sm:$0xff] }
  0x1e   : > { %v181_v30 = vmax.f32 %v177_v22, %v180_v26  ;;  %v155_v31 = vadd.f32 %v154_v11, %v153_v27  ;;  %v156_v32 = vsel %vm152_vm1, %v148_v9, 0.0  ;;  %v158_v34 = vsel %vm152_vm1, %v150_v14, 0.0  ;;  %v373_v11 = vld [vmem:[%s1070_s0 + $0x78] sm:$0xff]  ;;  %v379_v26 = vld [vmem:[%s1070_s0 + $0xa8] sm:$0xff] }
  0x1f   : > { %v175_v33 = vmax.f32 %v172_v20, %v174_v24  ;;  %v162_v35 = vadd.f32 %v161_v16, %v160_v12  ;;  %v163_v36 = vsel %vm152_vm1, %v149_v10, 0.0  ;;  %v165_v41 = vsel %vm152_vm1, %v151_v15, 0.0  ;;  %v372_v10 = vld [vmem:[%s1070_s0 + $0x70] sm:$0xff]  ;;  %v374_v15 = vld [vmem:[%s1070_s0 + $0x80] sm:$0xff]  ;;  %v375_v16 = vld [vmem:[%s1070_s0 + $0x88] sm:$0xff] }
  0x20   : > { %v182_v39 = vmax.f32 %v179_v25, %v181_v30  ;;  %v157_v40 = vadd.f32 %v156_v32, %v155_v31  ;;  %592 = vmatpush1.bf16.msra.mxu0 %v591_v57  ;;  %638 = vmatpush1.bf16.msra.mxu1 %v591_v57  ;;  %v594_v5 = vpack.c.bf16 %v369_v3, %v368_v63  ;;  %v376_v20 = vld [vmem:[%s1070_s0 + $0x90] sm:$0xff]  ;;  %v378_v25 = vld [vmem:[%s1070_s0 + $0xa0] sm:$0xff]  ;;  %v381_v31 = vld [vmem:[%s1070_s0 + $0xb8] sm:$0xff] }
  0x21   : > { %193 = vst.msk [vmem:[#allocation2 + $0x1b] sm:$0xff] %vm152_vm1, %v175_v33  ;;  %v164_v43 = vadd.f32 %v163_v36, %v162_v35  ;;  %593 = vmatprep.subr.bf16.mxu0 %v771_v1  ;;  %625 = vmatprep.subr.bf16.mxu1 %v771_v1  ;;  %v597_v9 = vpack.c.bf16 %v371_v7, %v370_v6  ;;  %v380_v30 = vld [vmem:[%s1070_s0 + $0xb0] sm:$0xff]  ;;  %v382_v35 = vld [vmem:[%s1070_s0 + $0xc0] sm:$0xff]  ;;  %v383_v36 = vld [vmem:[%s1070_s0 + $0xc8] sm:$0xff] }
  0x22   : > { %194 = vst.msk [vmem:[#allocation2 + $0x23] sm:$0xff] %vm152_vm1, %v182_v39  ;;  %v159_v44 = vadd.f32 %v158_v34, %v157_v40  ;;  %v600_v14 = vpack.c.bf16 %v373_v11, %v372_v10  ;;  %v603_v19 = vpack.c.bf16 %v375_v16, %v374_v15  ;;  %v606_v24 = vpack.c.bf16 %v377_v21, %v376_v20  ;;  %v384_v40 = vld [vmem:[%s1070_s0 + $0xd0] sm:$0xff] }
  0x23   : > { %v166_v46 = vadd.f32 %v165_v41, %v164_v43  ;;  %v609_v29 = vpack.c.bf16 %v379_v26, %v378_v25  ;;  %v612_v34 = vpack.c.bf16 %v381_v31, %v380_v30  ;;  %v615_v39 = vpack.c.bf16 %v383_v36, %v382_v35  ;;  %v385_v41 = vld [vmem:[%s1070_s0 + $0xd8] sm:$0xff] }
  0x24   : > { %v183_v49 = vmul.f32 0.25, %v159_v44  ;;  %595 = vmatpush1.bf16.msra.mxu0 %v594_v5  ;;  %639 = vmatpush1.bf16.msra.mxu1 %v594_v5  ;;  %v618_v44 = vpack.c.bf16 %v385_v41, %v384_v40 }
  0x25   : > { %v184_v50 = vmul.f32 0.25, %v166_v46  ;;  %596 = vmatprep.subr.bf16.mxu0 %v771_v1  ;;  %626 = vmatprep.subr.bf16.mxu1 %v771_v1 }
  0x26   : > { %190 = vst.msk [vmem:[#allocation2 + $0x3] sm:$0xff] %vm152_vm1, %v183_v49 }
  0x27   : > { %191 = vst.msk [vmem:[#allocation2 + $0xb] sm:$0xff] %vm152_vm1, %v184_v50 }
  0x28   : > { %v294_v54 = vld [vmem:[#allocation2 + $0x1a] sm:$0xff]  ;;  %598 = vmatpush1.bf16.msra.mxu0 %v597_v9  ;;  %640 = vmatpush1.bf16.msra.mxu1 %v597_v9 }
  0x29   : > { %v295_v55 = vld [vmem:[#allocation2 + $0x22] sm:$0xff]  ;;  %298 = vrot.lane.b32.xlu0 %v294_v54, %s772_s27  ;;  %v290_v60 = vld [vmem:[#allocation2 + $0x19] sm:$0xff]  ;;  %599 = vmatprep.subr.bf16.mxu0 %v771_v1 }
  0x2a   : > { %300 = vrot.lane.b32.xlu1 %v295_v55, %s772_s27  ;;  %v306_v56 = vld [vmem:[#allocation2 + $0x1b] sm:$0xff]  ;;  %v307_v58 = vld [vmem:[#allocation2 + $0x23] sm:$0xff]  ;;  %292 = vst.msk [vmem:[#allocation3 + $0x8] sm:$0xff] %vm152_vm1, %v290_v60  ;;  %627 = vmatprep.subr.bf16.mxu1 %v771_v1 }
  0x2b   : > { %v291_v59 = vld [vmem:[#allocation2 + $0x21] sm:$0xff]  ;;  %v277_v45 = vld [vmem:[#allocation2 + $0x18] sm:$0xff] }
  0x2c   : > { %293 = vst.msk [vmem:[#allocation3 + $0x18] sm:$0xff] %vm152_vm1, %v291_v59  ;;  %v318_v61 = vld [vmem:[#allocation2 + $0x1c] sm:$0xff]  ;;  %v319_v62 = vld [vmem:[#allocation2 + $0x24] sm:$0xff]  ;;  %601 = vmatpush1.bf16.msra.mxu0 %v600_v14  ;;  %641 = vmatpush1.bf16.msra.mxu1 %v600_v14 }
  0x2d   : > { %310 = vrot.lane.b32.xlu0 %v306_v56, %s773_s28  ;;  %v195_v0 = vld [vmem:[#allocation2] sm:$0xff]  ;;  %602 = vmatprep.subr.bf16.mxu0 %v771_v1 }
  0x2e   : > { %312 = vrot.lane.b32.xlu1 %v307_v58, %s773_s28  ;;  %v196_v2 = vld [vmem:[#allocation2 + $0x8] sm:$0xff]  ;;  %197 = vst.msk [vmem:[#allocation3] sm:$0xff] %vm152_vm1, %v195_v0  ;;  %628 = vmatprep.subr.bf16.mxu1 %v771_v1  ;;  %v330_v32 = vld [vmem:[#allocation2 + $0x1d] sm:$0xff] }
  0x2f   : > { %v199_v4 = vld [vmem:[#allocation2 + $0x1] sm:$0xff]  ;;  %198 = vst.msk [vmem:[#allocation3 + $0x10] sm:$0xff] %vm152_vm1, %v196_v2  ;;  %v200_v12 = vld [vmem:[#allocation2 + $0x9] sm:$0xff] }
  0x30   : > { %v212_v8 = vld [vmem:[#allocation2 + $0x2] sm:$0xff]  ;;  %v213_v13 = vld [vmem:[#allocation2 + $0xa] sm:$0xff]  ;;  %604 = vmatpush1.bf16.msra.mxu0 %v603_v19  ;;  %642 = vmatpush1.bf16.msra.mxu1 %v603_v19 }
  0x31   : > { %322 = vrot.lane.b32.xlu0 %v318_v61, %s774_s3  ;;  %v225_v17 = vld [vmem:[#allocation2 + $0x3] sm:$0xff]  ;;  %v226_v18 = vld [vmem:[#allocation2 + $0xb] sm:$0xff]  ;;  %605 = vmatprep.subr.bf16.mxu0 %v771_v1 }
  0x32   : > { %324 = vrot.lane.b32.xlu1 %v319_v62, %s774_s3  ;;  %v238_v22 = vld [vmem:[#allocation2 + $0x4] sm:$0xff]  ;;  %v239_v23 = vld [vmem:[#allocation2 + $0xc] sm:$0xff]  ;;  %629 = vmatprep.subr.bf16.mxu1 %v771_v1 }
  0x33   : > { %v251_v27 = vld [vmem:[#allocation2 + $0x5] sm:$0xff]  ;;  %v252_v28 = vld [vmem:[#allocation2 + $0xd] sm:$0xff] }
  0x34   : > { %607 = vmatpush1.bf16.msra.mxu0 %v606_v24  ;;  %643 = vmatpush1.bf16.msra.mxu1 %v606_v24  ;;  %v331_v33 = vld [vmem:[#allocation2 + $0x25] sm:$0xff]  ;;  %v265_v38 = vld [vmem:[#allocation2 + $0xe] sm:$0xff] }
  0x35   : > { %203 = vrot.lane.b32.xlu0 %v199_v4, %s772_s27  ;;  %608 = vmatprep.subr.bf16.mxu0 %v771_v1  ;;  %v264_v37 = vld [vmem:[#allocation2 + $0x6] sm:$0xff]  ;;  %v342_v42 = vld [vmem:[#allocation2 + $0x1e] sm:$0xff] }
  0x36   : > { %216 = vrot.lane.b32.xlu1 %v212_v8, %s773_s28  ;;  %630 = vmatprep.subr.bf16.mxu1 %v771_v1  ;;  %v343_v43 = vld [vmem:[#allocation2 + $0x26] sm:$0xff] }
  0x37   : > { %v278_v46 = vld [vmem:[#allocation2 + $0x20] sm:$0xff] }
  0x38   : > { %610 = vmatpush1.bf16.msra.mxu0 %v609_v29  ;;  %644 = vmatpush1.bf16.msra.mxu1 %v609_v29 }
  0x39   : > { %205 = vrot.lane.b32.xlu0 %v200_v12, %s772_s27  ;;  %611 = vmatprep.subr.bf16.mxu0 %v771_v1 }
  0x3a   : > { %218 = vrot.lane.b32.xlu1 %v213_v13, %s773_s28  ;;  %s775_s28 = smov 64   ;;  %631 = vmatprep.subr.bf16.mxu1 %v771_v1 }
  0x3c   : > { %613 = vmatpush1.bf16.msra.mxu0 %v612_v34  ;;  %645 = vmatpush1.bf16.msra.mxu1 %v612_v34 }
  0x3d   : > { %229 = vrot.lane.b32.xlu0 %v225_v17, %s774_s3  ;;  %614 = vmatprep.subr.bf16.mxu0 %v771_v1 }
  0x3e   : > { %231 = vrot.lane.b32.xlu1 %v226_v18, %s774_s3  ;;  %s776_s3 = smov 80   ;;  %632 = vmatprep.subr.bf16.mxu1 %v771_v1 }
  0x40   : > { %616 = vmatpush1.bf16.msra.mxu0 %v615_v39  ;;  %646 = vmatpush1.bf16.msra.mxu1 %v615_v39 }
  0x41   : > { %242 = vrot.lane.b32.xlu0 %v238_v22, %s775_s28  ;;  %617 = vmatprep.subr.bf16.mxu0 %v771_v1 }
  0x42   : > { %244 = vrot.lane.b32.xlu1 %v239_v23, %s775_s28  ;;  %633 = vmatprep.subr.bf16.mxu1 %v771_v1 }
  0x44   : > { %619 = vmatpush1.bf16.msra.mxu0 %v618_v44  ;;  %647 = vmatpush1.bf16.msra.mxu1 %v618_v44 }
  0x45   : > { %255 = vrot.lane.b32.xlu0 %v251_v27, %s776_s3 }
  0x46   : > { %257 = vrot.lane.b32.xlu1 %v252_v28, %s776_s3 }
  0x49   : > { %334 = vrot.lane.b32.xlu0 %v330_v32, %s775_s28 }
  0x4a   : > { %336 = vrot.lane.b32.xlu1 %v331_v33, %s775_s28  ;;  %s778_s28 = smov 112  }
  0x4d   : > { %268 = vrot.lane.b32.xlu0 %v264_v37, %s777_s26 }
  0x4e   : > { %270 = vrot.lane.b32.xlu1 %v265_v38, %s777_s26 }
  0x51   : > { %346 = vrot.lane.b32.xlu0 %v342_v42, %s776_s3 }
  0x52   : > { %348 = vrot.lane.b32.xlu1 %v343_v43, %s776_s3  ;;  %s577_s3 = sshll.u32 %s818_s13, 8  ;;  %s706_s13 = scalar_lea.vmem %s1020_s8, 256 }
  0x53   : > { %s1025_s17 = scalar_lea.hbm %s1072_s2, %s577_s3  ;;  %p707_p11 = scmp.ne.s32.totalorder %s1020_s8, %s706_s13 }
  0x54   : > { %p714_p1 = scmp.lt.s32.totalorder %s712_s24, %s706_s13 }
  0x55   : > { %281 = vrot.lane.b32.xlu0 %v277_v45, %s778_s28  ;;  %p708_p12 = pnand %p707_p11, %p835_p5 }
  0x56   : > { %283 = vrot.lane.b32.xlu1 %v278_v46, %s778_s28  ;;  %p715_p2 = por %p714_p1, %p713_p0 }
  0x57   : > { %p709_p13 = pneg %p708_p12 }
  0x59   : > { %p716_p3 = pnand %p715_p2, %p709_p13 }
  0x9b   : > { %v299_v47 = vpop.permute.xlu0 %298 }
  0x9c   : > { %v301_v48 = vpop.permute.xlu1 %300  ;;  %304 = vst.msk [vmem:[#allocation3 + $0x8] sm:$0xff] %vm209_vm2, %v299_v47 }
  0x9d   : > { %305 = vst.msk [vmem:[#allocation3 + $0x18] sm:$0xff] %vm209_vm2, %v301_v48 }
  0x9f   : > { %v311_v49 = vpop.permute.xlu0 %310 }
  0xa0   : > { %v313_v50 = vpop.permute.xlu1 %312  ;;  %316 = vst.msk [vmem:[#allocation3 + $0x8] sm:$0xff] %vm222_vm3, %v311_v49 }
  0xa1   : > { %317 = vst.msk [vmem:[#allocation3 + $0x18] sm:$0xff] %vm222_vm3, %v313_v50 }
  0xa3   : > { %v323_v1 = vpop.permute.xlu0 %322 }
  0xa4   : > { %v325_v51 = vpop.permute.xlu1 %324  ;;  %328 = vst.msk [vmem:[#allocation3 + $0x8] sm:$0xff] %vm235_vm4, %v323_v1 }
  0xa5   : > { %329 = vst.msk [vmem:[#allocation3 + $0x18] sm:$0xff] %vm235_vm4, %v325_v51 }
  0xa7   : > { %v204_v52 = vpop.permute.xlu0 %203 }
  0xa8   : > { %v217_v53 = vpop.permute.xlu1 %216  ;;  %210 = vst.msk [vmem:[#allocation3] sm:$0xff] %vm209_vm2, %v204_v52 }
  0xa9   : > { %223 = vst.msk [vmem:[#allocation3] sm:$0xff] %vm222_vm3, %v217_v53 }
  0xab   : > { %v206_v54 = vpop.permute.xlu0 %205 }
  0xac   : > { %v219_v55 = vpop.permute.xlu1 %218  ;;  %211 = vst.msk [vmem:[#allocation3 + $0x10] sm:$0xff] %vm209_vm2, %v206_v54 }
  0xad   : > { %224 = vst.msk [vmem:[#allocation3 + $0x10] sm:$0xff] %vm222_vm3, %v219_v55 }
  0xaf   : > { %v230_v56 = vpop.permute.xlu0 %229 }
  0xb0   : > { %v232_v57 = vpop.permute.xlu1 %231  ;;  %236 = vst.msk [vmem:[#allocation3] sm:$0xff] %vm235_vm4, %v230_v56 }
  0xb1   : > { %237 = vst.msk [vmem:[#allocation3 + $0x10] sm:$0xff] %vm235_vm4, %v232_v57 }
  0xb3   : > { %v243_v58 = vpop.permute.xlu0 %242 }
  0xb4   : > { %v245_v59 = vpop.permute.xlu1 %244  ;;  %249 = vst.msk [vmem:[#allocation3] sm:$0xff] %vm248_vm5, %v243_v58 }
  0xb5   : > { %250 = vst.msk [vmem:[#allocation3 + $0x10] sm:$0xff] %vm248_vm5, %v245_v59 }
  0xb7   : > { %v256_v60 = vpop.permute.xlu0 %255 }
  0xb8   : > { %v258_v61 = vpop.permute.xlu1 %257  ;;  %262 = vst.msk [vmem:[#allocation3] sm:$0xff] %vm261_vm6, %v256_v60 }
  0xb9   : > { %263 = vst.msk [vmem:[#allocation3 + $0x10] sm:$0xff] %vm261_vm6, %v258_v61 }
  0xbb   : > { %v335_v62 = vpop.permute.xlu0 %334 }
  0xbc   : > { %v337_v63 = vpop.permute.xlu1 %336  ;;  %340 = vst.msk [vmem:[#allocation3 + $0x8] sm:$0xff] %vm248_vm5, %v335_v62 }
  0xbd   : > { %341 = vst.msk [vmem:[#allocation3 + $0x18] sm:$0xff] %vm248_vm5, %v337_v63 }
  0xbf   : > { %v269_v0 = vpop.permute.xlu0 %268 }
  0xc0   : > { %v271_v2 = vpop.permute.xlu1 %270  ;;  %275 = vst.msk [vmem:[#allocation3] sm:$0xff] %vm274_vm7, %v269_v0 }
  0xc1   : > { %276 = vst.msk [vmem:[#allocation3 + $0x10] sm:$0xff] %vm274_vm7, %v271_v2 }
  0xc3   : > { %v347_v3 = vpop.permute.xlu0 %346 }
  0xc4   : > { %v349_v4 = vpop.permute.xlu1 %348  ;;  %352 = vst.msk [vmem:[#allocation3 + $0x8] sm:$0xff] %vm261_vm6, %v347_v3 }
  0xc5   : > { %353 = vst.msk [vmem:[#allocation3 + $0x18] sm:$0xff] %vm261_vm6, %v349_v4 }
  0xc7   : > { %v282_v5 = vpop.permute.xlu0 %281 }
  0xc8   : > { %v284_v6 = vpop.permute.xlu1 %283  ;;  %288 = vst.msk [vmem:[#allocation3] sm:$0xff] %vm287_vm8, %v282_v5 }
  0xc9   : > { %289 = vst.msk [vmem:[#allocation3 + $0x10] sm:$0xff] %vm287_vm8, %v284_v6 }
  0xcb   : > { %v355_v7 = vld [vmem:[#allocation3 + $0x8] sm:$0xff] }
  0xcc   : > { %567 = vmatprep.mubr.msk.f32.mxu0 %vm386_vm9, %v355_v7  ;;  %v357_v8 = vld [vmem:[#allocation3 + $0x18] sm:$0xff] }
  0xcd   : > { %568 = vmatprep.mubr.msk.f32.mxu1 %vm386_vm9, %v357_v8 }
  0xcf   : > { %v354_v9 = vld [vmem:[#allocation3] sm:$0xff] }
  0xd0   : > { %458 = vmatmul.mubr.f32.vlgmr.msra.gmra.mrb[0].mxu0 %v354_v9  ;;  %v356_v10 = vld [vmem:[#allocation3 + $0x10] sm:$0xff] }
  0xd1   : > { %463 = vmatmul.mubr.f32.vlgmr.msra.gmra.mrb[0].mxu1 %v356_v10 }
 0x1a3   : > { %v459_v11 = vpop.f32.mrb[0].mxu0 }
 0x1a4   : > { %v569_v12 = vmul.f32 -1.442695, %v459_v11  ;;  %v464_v13 = vpop.f32.mrb[0].mxu1  ;;  %v461_v14 = vpop.f32.mrb[1].mxu0 }
 0x1a5   : > { %v570_v15 = vmul.f32 -1.442695, %v464_v13  ;;  %v466_v16 = vpop.f32.mrb[1].mxu1 }
 0x1a6   : > { %698 = vpow2.f32 %v569_v12 }
 0x1a7   : > { %700 = vpow2.f32 %v570_v15 }
 0x1b0   : > { %v699_v17 = vpop.eup %698 }
 0x1b1   : > { %v701_v18 = vpop.eup %700  ;;  %v474_v19 = vadd.f32 1.0, %v699_v17 }
 0x1b2   : > { %v475_v20 = vadd.f32 1.0, %v701_v18 }
 0x1b3   : > { %702 = vrcp.f32 %v474_v19 }
 0x1b4   : > { %704 = vrcp.f32 %v475_v20 }
 0x1bd   : > { %v703_v21 = vpop.eup %702 }
 0x1be   : > { %v705_v22 = vpop.eup %704  ;;  %v480_v23 = vmul.f32 %v703_v21, %v459_v11 }
 0x1bf   : > { %v481_v24 = vmul.f32 %v705_v22, %v464_v13 }
 0x1c0   : > { %482 = vst.msk [vmem:[%s136_s7] sm:$0xff] %vm152_vm1, %v480_v23 }
 0x1c1   : > { %483 = vst.msk [vmem:[%s136_s7 + $0x8] sm:$0xff] %vm152_vm1, %v481_v24 }
 0x1c2   : > { %719 = shalt.err (!%p716_p3)
}
 0x1c3   : > { %s720_s25 = scalar_lea.hbm %s1025_s17, 256  ;;  %s724_s29 = scalar_lea.hbm %s1072_s2, 512 }
 0x1c4   : > { %p721_p4 = scmp.ne.s32.totalorder %s1025_s17, %s720_s25  ;;  %p725_p9 = scmp.lt.u32.totalorder %s1025_s17, %s1072_s2 }
 0x1c5   : > { %p726_p10 = scmp.lt.u32.totalorder %s724_s29, %s720_s25  ;;  %p728_p12 = scmp.lt.u32.totalorder %s720_s25, %s1025_s17 }
 0x1c6   : > { %p722_p7 = pnand %p721_p4, %p835_p5 }
 0x1c7   : > { %p727_p11 = por %p726_p10, %p725_p9 }
 0x1c8   : > { %p723_p8 = pneg %p722_p7 }
 0x1c9   : > { %p729_p13 = por %p728_p12, %p727_p11 }
 0x1cb   : > { %p730_p0 = pnand %p729_p13, %p723_p8 }
 0x1cd   : > { %733 = shalt.err (!%p730_p0)
}
 0x1ce   : > { %s780_s28 = smov 128   ;;  %s781_s5 = smov 8  }
 0x1cf   : > { %648 = dma.vmem_to_hbm [thread:$0]  (%p835_p5), %s1020_s8, 256, %s1025_s17, %s1029_s21, %s780_s28, %s780_s28, %s781_s5  }
 0x1d0 PF: > { %p654_p1 = scmp.ge.s32.totalorder %s768_s12, 2  ;;  %s513_s6 = sand.u32 1, %s756_s9  }
 0x1d1   : > { %s514_s7 = scalar_lea.sflag [#allocation5], %s513_s6 }
 0x1d2   : > { %p651_p2 = pnand %p654_p1, %p839_p6 }
 0x1d4   : > { %751 = dma.done.wait (!%p651_p2), %s514_s7, 256  }
 0x1d5   : > { %753 = vsyncadd (!%p651_p2), %s514_s7, 4294967040  ;;  %p12_p3 = scmp.ge.s32.totalorder %s822_s15, 4   ;;  %s1075_s9 = smov %s760_s10 }
 0x1d6   : > { %s1076_s10 = smov %s764_s11  ;;  %s1077_s11 = smov %s833_s18 }
 0x1d7   : > { %s1078_s12 = smov %s822_s15  ;;  %14 = sbr.rel (!%p12_p3) target bundleno = 3 (0x3), region = 65 }
 0x1de   :  { %519 = vsyncpa [#allocation5], 1 }
 0x1df   :  { %521 = vsyncpa [#allocation5 + $0x1], 1 }

</bundles_post_ra>
